<compile_context>
chip_gen: v5e
topology: v5e:2x2
jax: 0.10.0
libtpu: 0.0.40
codegen_flags: <defaults>
</compile_context>

<pallas_src>
import jax
import jax.numpy as jnp
from jax import lax
from jax.experimental import pallas as pl
from jax.experimental.pallas import tpu as pltpu

EPS = 1e-5


def digcn_kernel(x_ref, a_ref, wcat_ref, gamma_ref, beta_ref, o_ref):
    depth, dp, _ = wcat_ref.shape          # static shapes at trace time
    n = x_ref.shape[0]
    inv_n = 1.0 / n
    mxu_dtype = a_ref.dtype                # bf16 in production, f32 for the tight check

    a = a_ref[...]                         # [N, N] loaded once, reused every layer
    h = x_ref[...]                         # [N, Dp] f32 (residual/BN state stays f32)

    for d in range(depth):                 # static unroll (depth is tiny)
        # Fused linear + conv transform: [N, Dp] @ [Dp, 2*Dp] -> [N, 2*Dp].
        # Operands are cast to the MXU dtype; accumulation stays f32.
        hw = jnp.dot(h.astype(mxu_dtype), wcat_ref[d],
                     preferred_element_type=jnp.float32)
        hl = hw[:, :dp]                    # linear branch:  x @ Wl^T
        hg = hw[:, dp:]                    # conv transform: x @ Wg^T
        h = hl + jnp.dot(a, hg.astype(mxu_dtype),
                         preferred_element_type=jnp.float32)

        # BatchNorm1d (training mode, biased variance), single pass, f32 stats.
        s = jnp.sum(h, axis=0, keepdims=True)          # [1, Dp]
        ss = jnp.sum(h * h, axis=0, keepdims=True)     # [1, Dp]
        mean = s * inv_n
        var = jnp.maximum(ss * inv_n - mean * mean, 0.0)   # guard cancellation
        scale = gamma_ref[d] * lax.rsqrt(var + EPS)        # rsqrt -> EUP slot
        shift = beta_ref[d] - mean * scale
        h = h * scale + shift

        if d != depth - 1:                 # static: no select, no dead store
            h = jnp.maximum(h, 0.0)

    o_ref[...] = h.astype(o_ref.dtype)


def prepare_digcn_params(wl, wg, gamma, beta, mxu_dtype=jnp.bfloat16):
    """One-time parameter layout prep (hoisted out of the per-call path).

    wl/wg: [depth, D, D] in torch Linear layout [out, in]; gamma/beta:
    [depth, 1, D].  Returns (wcat[depth, Dp, 2*Dp] in mxu_dtype,
    gamma_pad, beta_pad in f32) with Dp = round_up(D, 128).
    """
    depth, D, _ = wl.shape
    Dp = ((D + 127) // 128) * 128          # lane-dense feature dim
    wlT = jnp.swapaxes(wl, 1, 2)           # [depth, D(in), D(out)]
    wgT = jnp.swapaxes(wg, 1, 2)
    wcat = (jnp.zeros((depth, Dp, 2 * Dp), jnp.float32)
            .at[:, :D, :D].set(wlT)
            .at[:, :D, Dp:Dp + D].set(wgT)
            .astype(mxu_dtype))            # Wcat = [Wl^T | Wg^T], MXU dtype
    # NOTE: gamma must be ZERO-padded (not ones): padded lanes then get
    # scale = 0 and shift = 0, so padded output columns stay exactly 0.
    gammap = jnp.zeros((depth, 1, Dp), jnp.float32).at[:, :, :D].set(gamma)
    betap = jnp.zeros((depth, 1, Dp), jnp.float32).at[:, :, :D].set(beta)
    return wcat, gammap, betap


@jax.jit
def digcn_forward(x, a_hat, wcat, gammap, betap):
    """x: [N, D] f32, a_hat: [N, N] (f32 or bf16), wcat/gammap/betap from
    prepare_digcn_params."""
    N, D = x.shape
    depth, Dp, Dp2 = wcat.shape

    # Only x padding stays on the per-call path.
    xp = jnp.zeros((N, Dp), jnp.float32).at[:, :D].set(x)

    in_bytes = (N * Dp * 4                              # x (padded, f32)
                + N * N * a_hat.dtype.itemsize          # A_hat
                + depth * Dp * Dp2 * wcat.dtype.itemsize  # Wcat
                + 2 * depth * Dp * 4)                   # gamma, beta
    out_bytes = N * Dp * 4
    flops = depth * (2 * N * Dp * Dp2 + 2 * N * N * Dp)

    # Everything is VMEM-resident for one grid step; double buffering of the
    # constant-index blocks still happens, so budget ~4x + headroom.
    vmem_limit = int(min(max(4 * (in_bytes + out_bytes) + (8 << 20), 32 << 20),
                         64 << 20))

    grid_spec = pltpu.PrefetchScalarGridSpec(
        num_scalar_prefetch=0,
        grid=(1,),                          # single step: depth unrolled inside
        in_specs=[
            pl.BlockSpec((N, Dp), lambda i: (0, 0)),               # x (padded)
            pl.BlockSpec((N, N), lambda i: (0, 0)),                # A_hat
            pl.BlockSpec((depth, Dp, Dp2), lambda i: (0, 0, 0)),   # Wcat
            pl.BlockSpec((depth, 1, Dp), lambda i: (0, 0, 0)),     # gamma
            pl.BlockSpec((depth, 1, Dp), lambda i: (0, 0, 0)),     # beta
        ],
        out_specs=pl.BlockSpec((N, Dp), lambda i: (0, 0)),
    )
    outp = pl.pallas_call(
        digcn_kernel,
        out_shape=jax.ShapeDtypeStruct((N, Dp), jnp.float32),
        grid_spec=grid_spec,
        compiler_params=pltpu.CompilerParams(
            dimension_semantics=("arbitrary",),
            vmem_limit_bytes=vmem_limit),
        cost_estimate=pl.CostEstimate(
            flops=flops,
            transcendentals=depth * Dp,
            bytes_accessed=in_bytes + out_bytes),
    )(xp, a_hat, wcat, gammap, betap)
    return outp[:, :D]


def build_normalized_adjacency(edge_index, edge_weight, num_nodes):
    """Dense A_hat matching torch_geometric GCNConv(add_self_loops=False) gcn_norm."""
    row, col = edge_index[0], edge_index[1]            # row = source, col = target
    deg = jnp.zeros((num_nodes,), jnp.float32).at[col].add(edge_weight)
    deg_inv_sqrt = jnp.where(deg > 0, deg ** -0.5, 0.0)
    norm_w = deg_inv_sqrt[row] * edge_weight * deg_inv_sqrt[col]
    a_hat = jnp.zeros((num_nodes, num_nodes), jnp.float32).at[col, row].add(norm_w)
    return a_hat


def reference_forward(x, a_hat, wl, wg, gamma, beta):
    depth = wl.shape[0]
    h = x
    for d in range(depth):
        h = h @ wl[d].T + a_hat @ (h @ wg[d].T)
        m = h.mean(axis=0, keepdims=True)
        v = ((h - m) ** 2).mean(axis=0, keepdims=True)
        h = (h - m) / jnp.sqrt(v + EPS) * gamma[d, 0] + beta[d, 0]
        if d != depth - 1:
            h = jnp.maximum(h, 0.0)
    return h


if __name__ == "__main__":
    key = jax.random.PRNGKey(0)
    N, D, depth = 16, 32, 3      # nodes, embed_dim, depth

    k_x, k_w, k_wl, k_wg = jax.random.split(key, 4)

    # Node features.
    x = jax.random.normal(k_x, (N, D), dtype=jnp.float32)

    # Synthetic directed graph: ring edges in both directions (E = 2N).
    src = jnp.concatenate([jnp.arange(N), (jnp.arange(N) + 1) % N])
    dst = jnp.concatenate([(jnp.arange(N) + 1) % N, jnp.arange(N)])
    edge_index = jnp.stack([src, dst]).astype(jnp.int32)     # [2, E]
    edge_weight = jax.random.uniform(k_w, (edge_index.shape[1],),
                                     dtype=jnp.float32, minval=0.5, maxval=1.5)

    a_hat = build_normalized_adjacency(edge_index, edge_weight, N)

    # Deterministic parameter init (torch Linear weight layout: [out_feats, in_feats]).
    scale = 1.0 / jnp.sqrt(jnp.float32(D))
    wl = jax.random.uniform(k_wl, (depth, D, D), jnp.float32, -scale, scale)
    wg = jax.random.uniform(k_wg, (depth, D, D), jnp.float32, -scale, scale)
    # Fresh BatchNorm1d params: gamma = 1, beta = 0.
    gamma = jnp.ones((depth, 1, D), jnp.float32)
    beta = jnp.zeros((depth, 1, D), jnp.float32)

    ref = reference_forward(x, a_hat, wl, wg, gamma, beta)

    # 1) f32 MXU operands: tight check of the kernel math.
    wcat32, gp, bp = prepare_digcn_params(wl, wg, gamma, beta,
                                          mxu_dtype=jnp.float32)
    out32 = jax.block_until_ready(digcn_forward(x, a_hat, wcat32, gp, bp))
    if not jnp.allclose(out32, ref, rtol=2e-3, atol=2e-3):
        raise AssertionError("Pallas DiGCN (f32 MXU) mismatch vs JAX reference")

    # 2) bf16 MXU operands (production path): f32 accumulation / BN stats, so the
    #    only error source is the 2^-8 operand quantization across 3 layers.
    wcat16, gp16, bp16 = prepare_digcn_params(wl, wg, gamma, beta)   # bf16 default
    out16 = jax.block_until_ready(
        digcn_forward(x, a_hat.astype(jnp.bfloat16), wcat16, gp16, bp16))
    if not jnp.allclose(out16, ref, rtol=3e-2, atol=3e-2):
        raise AssertionError("Pallas DiGCN (bf16 MXU) mismatch vs JAX reference")

    print("KERNEL_OK")
</pallas_src>

<mosaic_0001>
module attributes {stable_mosaic.version = 11 : i64} {
  func.func @digcn_kernel(%arg0: i32, %arg1: memref<16x128xf32, #tpu.memory_space<vmem>>, %arg2: memref<16x16xf32, #tpu.memory_space<vmem>>, %arg3: memref<3x128x256xf32, #tpu.memory_space<vmem>>, %arg4: memref<3x1x128xf32, #tpu.memory_space<vmem>>, %arg5: memref<3x1x128xf32, #tpu.memory_space<vmem>>, %arg6: memref<16x128xf32, #tpu.memory_space<vmem>>) attributes {dimension_semantics = [#tpu.dimension_semantics<arbitrary>], iteration_bounds = array<i64: 1>, scalar_prefetch = 0 : i64, scratch_operands = 0 : i64, tpu.core_type = #tpu.core_type<tc>, window_params = [{pipeline_mode = #tpu.pipeline_mode<synchronous>, transform_indices = @transform_0, window_bounds = array<i64: 16, 128>}, {pipeline_mode = #tpu.pipeline_mode<synchronous>, transform_indices = @transform_1, window_bounds = array<i64: 16, 16>}, {pipeline_mode = #tpu.pipeline_mode<synchronous>, transform_indices = @transform_2, window_bounds = array<i64: 3, 128, 256>}, {pipeline_mode = #tpu.pipeline_mode<synchronous>, transform_indices = @transform_3, window_bounds = array<i64: 3, 1, 128>}, {pipeline_mode = #tpu.pipeline_mode<synchronous>, transform_indices = @transform_4, window_bounds = array<i64: 3, 1, 128>}, {pipeline_mode = #tpu.pipeline_mode<synchronous>, transform_indices = @transform_5, window_bounds = array<i64: 16, 128>}]} {
    %c0 = arith.constant 0 : index
    %c0_0 = arith.constant 0 : index
    %0 = vector.load %arg2[%c0, %c0_0] : memref<16x16xf32, #tpu.memory_space<vmem>>, vector<16x16xf32>
    %c0_1 = arith.constant 0 : index
    %c0_2 = arith.constant 0 : index
    %1 = vector.load %arg1[%c0_1, %c0_2] : memref<16x128xf32, #tpu.memory_space<vmem>>, vector<16x128xf32>
    %c0_3 = arith.constant 0 : index
    %c0_4 = arith.constant 0 : index
    %c0_5 = arith.constant 0 : index
    %2 = vector.load %arg3[%c0_3, %c0_4, %c0_5] : memref<3x128x256xf32, #tpu.memory_space<vmem>>, vector<1x128x256xf32>
    %3 = vector.shape_cast %2 : vector<1x128x256xf32> to vector<128x256xf32>
    %cst = arith.constant dense<0.000000e+00> : vector<16x256xf32>
    %4 = tpu.matmul %1, %3, %cst {dimension_numbers = #tpu.dot_dimension_numbers<[1], [0], [0], [1], [0, 0, 1, 1], [], []>} : vector<16x128xf32>, vector<128x256xf32>, vector<16x256xf32> -> vector<16x256xf32>
    %5 = vector.extract_strided_slice %4 {offsets = [0, 0], sizes = [16, 128], strides = [1, 1]} : vector<16x256xf32> to vector<16x128xf32>
    %6 = vector.extract_strided_slice %4 {offsets = [0, 128], sizes = [16, 128], strides = [1, 1]} : vector<16x256xf32> to vector<16x128xf32>
    %cst_6 = arith.constant dense<0.000000e+00> : vector<16x128xf32>
    %7 = tpu.matmul %0, %6, %cst_6 {dimension_numbers = #tpu.dot_dimension_numbers<[1], [0], [0], [1], [0, 0, 1, 1], [], []>} : vector<16x16xf32>, vector<16x128xf32>, vector<16x128xf32> -> vector<16x128xf32>
    %8 = arith.addf %5, %7 : vector<16x128xf32>
    %cst_7 = arith.constant dense<0.000000e+00> : vector<128xf32>
    %9 = vector.multi_reduction <add>, %8, %cst_7 [0] : vector<16x128xf32> to vector<128xf32>
    %10 = vector.shape_cast %9 : vector<128xf32> to vector<1x128xf32>
    %11 = arith.mulf %8, %8 : vector<16x128xf32>
    %cst_8 = arith.constant dense<0.000000e+00> : vector<128xf32>
    %12 = vector.multi_reduction <add>, %11, %cst_8 [0] : vector<16x128xf32> to vector<128xf32>
    %13 = vector.shape_cast %12 : vector<128xf32> to vector<1x128xf32>
    %cst_9 = arith.constant 6.250000e-02 : f32
    %14 = vector.broadcast %cst_9 : f32 to vector<1x128xf32>
    %15 = arith.mulf %10, %14 : vector<1x128xf32>
    %cst_10 = arith.constant 6.250000e-02 : f32
    %16 = vector.broadcast %cst_10 : f32 to vector<1x128xf32>
    %17 = arith.mulf %13, %16 : vector<1x128xf32>
    %18 = arith.mulf %15, %15 : vector<1x128xf32>
    %19 = arith.subf %17, %18 : vector<1x128xf32>
    %cst_11 = arith.constant 0.000000e+00 : f32
    %20 = vector.broadcast %cst_11 : f32 to vector<1x128xf32>
    %21 = arith.maximumf %19, %20 : vector<1x128xf32>
    %c0_12 = arith.constant 0 : index
    %c0_13 = arith.constant 0 : index
    %c0_14 = arith.constant 0 : index
    %22 = vector.load %arg4[%c0_12, %c0_13, %c0_14] : memref<3x1x128xf32, #tpu.memory_space<vmem>>, vector<1x1x128xf32>
    %23 = vector.shape_cast %22 : vector<1x1x128xf32> to vector<1x128xf32>
    %cst_15 = arith.constant 9.99999974E-6 : f32
    %24 = vector.broadcast %cst_15 : f32 to vector<1x128xf32>
    %25 = arith.addf %21, %24 : vector<1x128xf32>
    %26 = math.rsqrt %25 : vector<1x128xf32>
    %27 = arith.mulf %23, %26 : vector<1x128xf32>
    %c0_16 = arith.constant 0 : index
    %c0_17 = arith.constant 0 : index
    %c0_18 = arith.constant 0 : index
    %28 = vector.load %arg5[%c0_16, %c0_17, %c0_18] : memref<3x1x128xf32, #tpu.memory_space<vmem>>, vector<1x1x128xf32>
    %29 = vector.shape_cast %28 : vector<1x1x128xf32> to vector<1x128xf32>
    %30 = arith.mulf %15, %27 : vector<1x128xf32>
    %31 = arith.subf %29, %30 : vector<1x128xf32>
    %32 = vector.broadcast %27 : vector<1x128xf32> to vector<16x128xf32>
    %33 = arith.mulf %8, %32 : vector<16x128xf32>
    %34 = vector.broadcast %31 : vector<1x128xf32> to vector<16x128xf32>
    %35 = arith.addf %33, %34 : vector<16x128xf32>
    %cst_19 = arith.constant 0.000000e+00 : f32
    %36 = vector.broadcast %cst_19 : f32 to vector<16x128xf32>
    %37 = arith.maximumf %35, %36 : vector<16x128xf32>
    %c1 = arith.constant 1 : index
    %c0_20 = arith.constant 0 : index
    %c0_21 = arith.constant 0 : index
    %38 = vector.load %arg3[%c1, %c0_20, %c0_21] : memref<3x128x256xf32, #tpu.memory_space<vmem>>, vector<1x128x256xf32>
    %39 = vector.shape_cast %38 : vector<1x128x256xf32> to vector<128x256xf32>
    %cst_22 = arith.constant dense<0.000000e+00> : vector<16x256xf32>
    %40 = tpu.matmul %37, %39, %cst_22 {dimension_numbers = #tpu.dot_dimension_numbers<[1], [0], [0], [1], [0, 0, 1, 1], [], []>} : vector<16x128xf32>, vector<128x256xf32>, vector<16x256xf32> -> vector<16x256xf32>
    %41 = vector.extract_strided_slice %40 {offsets = [0, 0], sizes = [16, 128], strides = [1, 1]} : vector<16x256xf32> to vector<16x128xf32>
    %42 = vector.extract_strided_slice %40 {offsets = [0, 128], sizes = [16, 128], strides = [1, 1]} : vector<16x256xf32> to vector<16x128xf32>
    %cst_23 = arith.constant dense<0.000000e+00> : vector<16x128xf32>
    %43 = tpu.matmul %0, %42, %cst_23 {dimension_numbers = #tpu.dot_dimension_numbers<[1], [0], [0], [1], [0, 0, 1, 1], [], []>} : vector<16x16xf32>, vector<16x128xf32>, vector<16x128xf32> -> vector<16x128xf32>
    %44 = arith.addf %41, %43 : vector<16x128xf32>
    %cst_24 = arith.constant dense<0.000000e+00> : vector<128xf32>
    %45 = vector.multi_reduction <add>, %44, %cst_24 [0] : vector<16x128xf32> to vector<128xf32>
    %46 = vector.shape_cast %45 : vector<128xf32> to vector<1x128xf32>
    %47 = arith.mulf %44, %44 : vector<16x128xf32>
    %cst_25 = arith.constant dense<0.000000e+00> : vector<128xf32>
    %48 = vector.multi_reduction <add>, %47, %cst_25 [0] : vector<16x128xf32> to vector<128xf32>
    %49 = vector.shape_cast %48 : vector<128xf32> to vector<1x128xf32>
    %cst_26 = arith.constant 6.250000e-02 : f32
    %50 = vector.broadcast %cst_26 : f32 to vector<1x128xf32>
    %51 = arith.mulf %46, %50 : vector<1x128xf32>
    %cst_27 = arith.constant 6.250000e-02 : f32
    %52 = vector.broadcast %cst_27 : f32 to vector<1x128xf32>
    %53 = arith.mulf %49, %52 : vector<1x128xf32>
    %54 = arith.mulf %51, %51 : vector<1x128xf32>
    %55 = arith.subf %53, %54 : vector<1x128xf32>
    %cst_28 = arith.constant 0.000000e+00 : f32
    %56 = vector.broadcast %cst_28 : f32 to vector<1x128xf32>
    %57 = arith.maximumf %55, %56 : vector<1x128xf32>
    %c1_29 = arith.constant 1 : index
    %c0_30 = arith.constant 0 : index
    %c0_31 = arith.constant 0 : index
    %58 = vector.load %arg4[%c1_29, %c0_30, %c0_31] : memref<3x1x128xf32, #tpu.memory_space<vmem>>, vector<1x1x128xf32>
    %59 = vector.shape_cast %58 : vector<1x1x128xf32> to vector<1x128xf32>
    %cst_32 = arith.constant 9.99999974E-6 : f32
    %60 = vector.broadcast %cst_32 : f32 to vector<1x128xf32>
    %61 = arith.addf %57, %60 : vector<1x128xf32>
    %62 = math.rsqrt %61 : vector<1x128xf32>
    %63 = arith.mulf %59, %62 : vector<1x128xf32>
    %c1_33 = arith.constant 1 : index
    %c0_34 = arith.constant 0 : index
    %c0_35 = arith.constant 0 : index
    %64 = vector.load %arg5[%c1_33, %c0_34, %c0_35] : memref<3x1x128xf32, #tpu.memory_space<vmem>>, vector<1x1x128xf32>
    %65 = vector.shape_cast %64 : vector<1x1x128xf32> to vector<1x128xf32>
    %66 = arith.mulf %51, %63 : vector<1x128xf32>
    %67 = arith.subf %65, %66 : vector<1x128xf32>
    %68 = vector.broadcast %63 : vector<1x128xf32> to vector<16x128xf32>
    %69 = arith.mulf %44, %68 : vector<16x128xf32>
    %70 = vector.broadcast %67 : vector<1x128xf32> to vector<16x128xf32>
    %71 = arith.addf %69, %70 : vector<16x128xf32>
    %cst_36 = arith.constant 0.000000e+00 : f32
    %72 = vector.broadcast %cst_36 : f32 to vector<16x128xf32>
    %73 = arith.maximumf %71, %72 : vector<16x128xf32>
    %c2 = arith.constant 2 : index
    %c0_37 = arith.constant 0 : index
    %c0_38 = arith.constant 0 : index
    %74 = vector.load %arg3[%c2, %c0_37, %c0_38] : memref<3x128x256xf32, #tpu.memory_space<vmem>>, vector<1x128x256xf32>
    %75 = vector.shape_cast %74 : vector<1x128x256xf32> to vector<128x256xf32>
    %cst_39 = arith.constant dense<0.000000e+00> : vector<16x256xf32>
    %76 = tpu.matmul %73, %75, %cst_39 {dimension_numbers = #tpu.dot_dimension_numbers<[1], [0], [0], [1], [0, 0, 1, 1], [], []>} : vector<16x128xf32>, vector<128x256xf32>, vector<16x256xf32> -> vector<16x256xf32>
    %77 = vector.extract_strided_slice %76 {offsets = [0, 0], sizes = [16, 128], strides = [1, 1]} : vector<16x256xf32> to vector<16x128xf32>
    %78 = vector.extract_strided_slice %76 {offsets = [0, 128], sizes = [16, 128], strides = [1, 1]} : vector<16x256xf32> to vector<16x128xf32>
    %cst_40 = arith.constant dense<0.000000e+00> : vector<16x128xf32>
    %79 = tpu.matmul %0, %78, %cst_40 {dimension_numbers = #tpu.dot_dimension_numbers<[1], [0], [0], [1], [0, 0, 1, 1], [], []>} : vector<16x16xf32>, vector<16x128xf32>, vector<16x128xf32> -> vector<16x128xf32>
    %80 = arith.addf %77, %79 : vector<16x128xf32>
    %cst_41 = arith.constant dense<0.000000e+00> : vector<128xf32>
    %81 = vector.multi_reduction <add>, %80, %cst_41 [0] : vector<16x128xf32> to vector<128xf32>
    %82 = vector.shape_cast %81 : vector<128xf32> to vector<1x128xf32>
    %83 = arith.mulf %80, %80 : vector<16x128xf32>
    %cst_42 = arith.constant dense<0.000000e+00> : vector<128xf32>
    %84 = vector.multi_reduction <add>, %83, %cst_42 [0] : vector<16x128xf32> to vector<128xf32>
    %85 = vector.shape_cast %84 : vector<128xf32> to vector<1x128xf32>
    %cst_43 = arith.constant 6.250000e-02 : f32
    %86 = vector.broadcast %cst_43 : f32 to vector<1x128xf32>
    %87 = arith.mulf %82, %86 : vector<1x128xf32>
    %cst_44 = arith.constant 6.250000e-02 : f32
    %88 = vector.broadcast %cst_44 : f32 to vector<1x128xf32>
    %89 = arith.mulf %85, %88 : vector<1x128xf32>
    %90 = arith.mulf %87, %87 : vector<1x128xf32>
    %91 = arith.subf %89, %90 : vector<1x128xf32>
    %cst_45 = arith.constant 0.000000e+00 : f32
    %92 = vector.broadcast %cst_45 : f32 to vector<1x128xf32>
    %93 = arith.maximumf %91, %92 : vector<1x128xf32>
    %c2_46 = arith.constant 2 : index
    %c0_47 = arith.constant 0 : index
    %c0_48 = arith.constant 0 : index
    %94 = vector.load %arg4[%c2_46, %c0_47, %c0_48] : memref<3x1x128xf32, #tpu.memory_space<vmem>>, vector<1x1x128xf32>
    %95 = vector.shape_cast %94 : vector<1x1x128xf32> to vector<1x128xf32>
    %cst_49 = arith.constant 9.99999974E-6 : f32
    %96 = vector.broadcast %cst_49 : f32 to vector<1x128xf32>
    %97 = arith.addf %93, %96 : vector<1x128xf32>
    %98 = math.rsqrt %97 : vector<1x128xf32>
    %99 = arith.mulf %95, %98 : vector<1x128xf32>
    %c2_50 = arith.constant 2 : index
    %c0_51 = arith.constant 0 : index
    %c0_52 = arith.constant 0 : index
    %100 = vector.load %arg5[%c2_50, %c0_51, %c0_52] : memref<3x1x128xf32, #tpu.memory_space<vmem>>, vector<1x1x128xf32>
    %101 = vector.shape_cast %100 : vector<1x1x128xf32> to vector<1x128xf32>
    %102 = arith.mulf %87, %99 : vector<1x128xf32>
    %103 = arith.subf %101, %102 : vector<1x128xf32>
    %104 = vector.broadcast %99 : vector<1x128xf32> to vector<16x128xf32>
    %105 = arith.mulf %80, %104 : vector<16x128xf32>
    %106 = vector.broadcast %103 : vector<1x128xf32> to vector<16x128xf32>
    %107 = arith.addf %105, %106 : vector<16x128xf32>
    %c0_53 = arith.constant 0 : index
    %c0_54 = arith.constant 0 : index
    %108 = vector.load %arg6[%c0_53, %c0_54] : memref<16x128xf32, #tpu.memory_space<vmem>>, vector<16x128xf32>
    tpu.vector_store %arg6[%c0_53, %c0_54], %107 {strides = array<i32>} : memref<16x128xf32, #tpu.memory_space<vmem>>, vector<16x128xf32>,
    return
  }
  func.func @transform_0(%arg0: i32) -> (i32, i32) {
    %c0_i32 = arith.constant 0 : i32
    %c0_i32_0 = arith.constant 0 : i32
    %c0_i32_1 = arith.constant 0 : i32
    return %c0_i32, %c0_i32_0 : i32, i32
  }
  func.func @transform_1(%arg0: i32) -> (i32, i32) {
    %c0_i32 = arith.constant 0 : i32
    %c0_i32_0 = arith.constant 0 : i32
    %c0_i32_1 = arith.constant 0 : i32
    return %c0_i32, %c0_i32_0 : i32, i32
  }
  func.func @transform_2(%arg0: i32) -> (i32, i32, i32) {
    %c0_i32 = arith.constant 0 : i32
    %c0_i32_0 = arith.constant 0 : i32
    %c0_i32_1 = arith.constant 0 : i32
    %c0_i32_2 = arith.constant 0 : i32
    return %c0_i32, %c0_i32_0, %c0_i32_1 : i32, i32, i32
  }
  func.func @transform_3(%arg0: i32) -> (i32, i32, i32) {
    %c0_i32 = arith.constant 0 : i32
    %c0_i32_0 = arith.constant 0 : i32
    %c0_i32_1 = arith.constant 0 : i32
    %c0_i32_2 = arith.constant 0 : i32
    return %c0_i32, %c0_i32_0, %c0_i32_1 : i32, i32, i32
  }
  func.func @transform_4(%arg0: i32) -> (i32, i32, i32) {
    %c0_i32 = arith.constant 0 : i32
    %c0_i32_0 = arith.constant 0 : i32
    %c0_i32_1 = arith.constant 0 : i32
    %c0_i32_2 = arith.constant 0 : i32
    return %c0_i32, %c0_i32_0, %c0_i32_1 : i32, i32, i32
  }
  func.func @transform_5(%arg0: i32) -> (i32, i32) {
    %c0_i32 = arith.constant 0 : i32
    %c0_i32_0 = arith.constant 0 : i32
    %c0_i32_1 = arith.constant 0 : i32
    return %c0_i32, %c0_i32_0 : i32, i32
  }
}

</mosaic_0001>

<bundles_post_ra>
// kernel: digcn_forward.1
= control target key start
LH: loop header
LB: loop body
LE: loop exit
PB: predicated region body
PF: predicated region fallthrough
CT: control target
= control target key end

     0   :  { %10 = vsyncpa [#allocation3], 0  ;;  %s715_s0 = inlined_call_operand.vmem [shape: f32[16,128], index: 0, kind: input, shape index: {}]   ;;  %s716_s1 = inlined_call_operand.vmem [shape: f32[16,16], index: 1, kind: input, shape index: {}]   ;;  %s717_s2 = inlined_call_operand.hbm [shape: f32[3,128,256], index: 2, kind: input, shape index: {}]   ;;  %s718_s3 = inlined_call_operand.vmem [shape: f32[3,1,128], index: 3, kind: input, shape index: {}]   ;;  %s719_s4 = inlined_call_operand.vmem [shape: f32[3,1,128], index: 4, kind: input, shape index: {}]   ;;  %s720_s5 = inlined_call_operand.hbm [shape: f32[16,128], index: 5, kind: output, shape index: {}]  }
   0x1   :  { %11 = vsyncpa [#allocation4], 0  ;;  %s20_s20 = sshll.u32 %s717_s2, 4  ;;  %s603_s21 = smov [#allocation2]   ;;  %s21_s20 = int_to_ptr.hbm [resolvable:$true] %s20_s20 }
   0x2   :  { %s22_s22 = sshll.u32 %s603_s21, 4  ;;  %s604_s23 = smov 256   ;;  %s23_s22 = int_to_ptr.vmem [resolvable:$true] %s22_s22 }
   0x3   :  { %s605_s24 = smov 16  }
   0x4   :  { %28 = dma.hbm_to_vmem [thread:$0]  %s21_s20, 12288, %s23_s22, [#allocation3], %s604_s23, %s604_s23, %s605_s24  }
   0x5   :  { %599 = dma.done.wait [#allocation3], 12288  }
   0x6   :  { %600 = vsyncadd [#allocation3], 4294955008  ;;  %v72_v0 = vld [vmem:[#allocation2 + $0xf8] sm:$0xff]  ;;  %v70_v1 = vld [vmem:[#allocation2 + $0xe8] sm:$0xff]  ;;  %vm119_vm0 = vcmask 130048   ;;  %s606_s17 = smov [#allocation5]  }
   0x7   :  { %96 = vmatpush.msra.mxu1 %v72_v0  ;;  %v68_v2 = vld [vmem:[#allocation2 + $0xd8] sm:$0xff]  ;;  %v66_v3 = vld [vmem:[#allocation2 + $0xc8] sm:$0xff]  ;;  %v71_v6 = vld [vmem:[#allocation2 + $0xf0] sm:$0xff]  ;;  %s514_s18 = sshll.u32 %s606_s17, 4  ;;  %s516_s21 = sshll.u32 %s720_s5, 4  ;;  %s515_s18 = int_to_ptr.vmem [resolvable:$true] %s514_s18  ;;  %s517_s21 = int_to_ptr.hbm [resolvable:$true] %s516_s21 }
   0x8   :  { %v64_v4 = vld [vmem:[#allocation2 + $0xb8] sm:$0xff]  ;;  %v62_v5 = vld [vmem:[#allocation2 + $0xa8] sm:$0xff]  ;;  %v69_v7 = vld [vmem:[#allocation2 + $0xe0] sm:$0xff]  ;;  %73 = vmatpush.msra.mxu0 %v71_v6 }
   0x9   :  { %97 = vmatpush.msra.mxu1 %v70_v1  ;;  %v60_v8 = vld [vmem:[#allocation2 + $0x98] sm:$0xff]  ;;  %v67_v9 = vld [vmem:[#allocation2 + $0xd0] sm:$0xff]  ;;  %v58_v10 = vld [vmem:[#allocation2 + $0x88] sm:$0xff] }
   0xa   :  { %74 = vmatpush.msra.mxu0 %v69_v7  ;;  %v65_v11 = vld [vmem:[#allocation2 + $0xc0] sm:$0xff]  ;;  %v56_v12 = vld [vmem:[#allocation2 + $0x78] sm:$0xff]  ;;  %v63_v13 = vld [vmem:[#allocation2 + $0xb0] sm:$0xff] }
   0xb   :  { %98 = vmatpush.msra.mxu1 %v68_v2  ;;  %v54_v14 = vld [vmem:[#allocation2 + $0x68] sm:$0xff]  ;;  %v61_v15 = vld [vmem:[#allocation2 + $0xa0] sm:$0xff]  ;;  %v52_v16 = vld [vmem:[#allocation2 + $0x58] sm:$0xff] }
   0xc   :  { %75 = vmatpush.msra.mxu0 %v67_v9  ;;  %v59_v17 = vld [vmem:[#allocation2 + $0x90] sm:$0xff]  ;;  %v50_v18 = vld [vmem:[#allocation2 + $0x48] sm:$0xff]  ;;  %v48_v19 = vld [vmem:[#allocation2 + $0x38] sm:$0xff] }
   0xd   :  { %99 = vmatpush.msra.mxu1 %v66_v3  ;;  %v46_v20 = vld [vmem:[#allocation2 + $0x28] sm:$0xff]  ;;  %v44_v21 = vld [vmem:[#allocation2 + $0x18] sm:$0xff]  ;;  %v39_v23 = vld [vmem:[%s715_s0] sm:$0xff] }
   0xe   :  { %76 = vmatpush.msra.mxu0 %v65_v11  ;;  %v42_v22 = vld [vmem:[#allocation2 + $0x8] sm:$0xff]  ;;  %v57_v25 = vld [vmem:[#allocation2 + $0x80] sm:$0xff]  ;;  %v55_v26 = vld [vmem:[#allocation2 + $0x70] sm:$0xff] }
   0xf   :  { %100 = vmatpush.msra.mxu1 %v64_v4  ;;  %v40_v24 = vld [vmem:[%s715_s0 + $0x8] sm:$0xff]  ;;  %v53_v27 = vld [vmem:[#allocation2 + $0x60] sm:$0xff]  ;;  %v51_v28 = vld [vmem:[#allocation2 + $0x50] sm:$0xff] }
  0x10   :  { %77 = vmatpush.msra.mxu0 %v63_v13  ;;  %v49_v29 = vld [vmem:[#allocation2 + $0x40] sm:$0xff]  ;;  %v47_v30 = vld [vmem:[#allocation2 + $0x30] sm:$0xff]  ;;  %v658_v37 = vld [vmem:[%s716_s1 + $0x8] sm:$0xff] }
  0x11   :  { %101 = vmatpush.msra.mxu1 %v62_v5  ;;  %v45_v31 = vld [vmem:[#allocation2 + $0x20] sm:$0xff]  ;;  %v43_v32 = vld [vmem:[#allocation2 + $0x10] sm:$0xff]  ;;  %v232_v39 = vld [vmem:[#allocation2 + $0x1f8] sm:$0xff] }
  0x12   :  { %78 = vmatpush.msra.mxu0 %v61_v15  ;;  %v41_v33 = vld [vmem:[#allocation2] sm:$0xff]  ;;  %v231_v38 = vld [vmem:[#allocation2 + $0x1f0] sm:$0xff]  ;;  %v230_v42 = vld [vmem:[#allocation2 + $0x1e8] sm:$0xff] }
  0x13   :  { %102 = vmatpush.msra.mxu1 %v60_v8  ;;  %v651_v36 = vld [vmem:[%s716_s1] sm:$0xff]  ;;  %233 = vmatpush.msra.mxu3 %v231_v38  ;;  %v227_v43 = vld [vmem:[#allocation2 + $0x1d0] sm:$0xff]  ;;  %v228_v44 = vld [vmem:[#allocation2 + $0x1d8] sm:$0xff] }
  0x14   :  { %79 = vmatpush.msra.mxu0 %v59_v17  ;;  %v229_v40 = vld [vmem:[#allocation2 + $0x1e0] sm:$0xff]  ;;  %v226_v46 = vld [vmem:[#allocation2 + $0x1c8] sm:$0xff]  ;;  %v223_v48 = vld [vmem:[#allocation2 + $0x1b0] sm:$0xff] }
  0x15   :  { %103 = vmatpush.msra.mxu1 %v58_v10  ;;  %234 = vmatpush.msra.mxu3 %v229_v40  ;;  %v225_v45 = vld [vmem:[#allocation2 + $0x1c0] sm:$0xff]  ;;  %v224_v49 = vld [vmem:[#allocation2 + $0x1b8] sm:$0xff]  ;;  %v222_v51 = vld [vmem:[#allocation2 + $0x1a8] sm:$0xff] }
  0x16   :  { %80 = vmatpush.msra.mxu0 %v57_v25  ;;  %v221_v50 = vld [vmem:[#allocation2 + $0x1a0] sm:$0xff]  ;;  %v219_v52 = vld [vmem:[#allocation2 + $0x190] sm:$0xff]  ;;  %v220_v53 = vld [vmem:[#allocation2 + $0x198] sm:$0xff] }
  0x17   :  { %104 = vmatpush.msra.mxu1 %v56_v12  ;;  %235 = vmatpush.msra.mxu3 %v227_v43  ;;  %v217_v56 = vld [vmem:[#allocation2 + $0x180] sm:$0xff]  ;;  %v218_v57 = vld [vmem:[#allocation2 + $0x188] sm:$0xff]  ;;  %v215_v60 = vld [vmem:[#allocation2 + $0x170] sm:$0xff] }
  0x18   :  { %81 = vmatpush.msra.mxu0 %v55_v26  ;;  %v216_v61 = vld [vmem:[#allocation2 + $0x178] sm:$0xff]  ;;  %v213_v1 = vld [vmem:[#allocation2 + $0x160] sm:$0xff]  ;;  %v214_v2 = vld [vmem:[#allocation2 + $0x168] sm:$0xff] }
  0x19   :  { %105 = vmatpush.msra.mxu1 %v54_v14  ;;  %236 = vmatpush.msra.mxu3 %v225_v45  ;;  %v211_v5 = vld [vmem:[#allocation2 + $0x150] sm:$0xff]  ;;  %v212_v6 = vld [vmem:[#allocation2 + $0x158] sm:$0xff]  ;;  %v209_v9 = vld [vmem:[#allocation2 + $0x140] sm:$0xff] }
  0x1a   :  { %82 = vmatpush.msra.mxu0 %v53_v27  ;;  %v210_v10 = vld [vmem:[#allocation2 + $0x148] sm:$0xff]  ;;  %v207_v13 = vld [vmem:[#allocation2 + $0x130] sm:$0xff]  ;;  %v208_v14 = vld [vmem:[#allocation2 + $0x138] sm:$0xff] }
  0x1b   :  { %106 = vmatpush.msra.mxu1 %v52_v16  ;;  %237 = vmatpush.msra.mxu3 %v223_v48  ;;  %v205_v17 = vld [vmem:[#allocation2 + $0x120] sm:$0xff]  ;;  %v202_v25 = vld [vmem:[#allocation2 + $0x108] sm:$0xff] }
  0x1c   :  { %83 = vmatpush.msra.mxu0 %v51_v28  ;;  %v185_v45 = vld [vmem:[%s719_s4] sm:$0x1] }
  0x1d   :  { %107 = vmatpush.msra.mxu1 %v50_v18  ;;  %238 = vmatpush.msra.mxu3 %v221_v50  ;;  %v206_v18 = vld [vmem:[#allocation2 + $0x128] sm:$0xff] }
  0x1e   :  { %84 = vmatpush.msra.mxu0 %v49_v29 }
  0x1f   :  { %108 = vmatpush.msra.mxu1 %v48_v19  ;;  %239 = vmatpush.msra.mxu3 %v219_v52 }
  0x20   :  { %85 = vmatpush.msra.mxu0 %v47_v30 }
  0x21   :  { %109 = vmatpush.msra.mxu1 %v46_v20  ;;  %240 = vmatpush.msra.mxu3 %v217_v56  ;;  %v203_v20 = vld [vmem:[#allocation2 + $0x110] sm:$0xff] }
  0x22   :  { %86 = vmatpush.msra.mxu0 %v45_v31 }
  0x23   :  { %110 = vmatpush.msra.mxu1 %v44_v21  ;;  %241 = vmatpush.msra.mxu3 %v215_v60  ;;  %v204_v21 = vld [vmem:[#allocation2 + $0x118] sm:$0xff] }
  0x24   :  { %87 = vmatpush.msra.mxu0 %v43_v32  ;;  %v387_v60 = vld [vmem:[#allocation2 + $0x2f8] sm:$0xff] }
  0x25   :  { %111 = vmatpush.msra.mxu1 %v42_v22  ;;  %242 = vmatpush.msra.mxu3 %v213_v1  ;;  %v380_v1 = vld [vmem:[#allocation2 + $0x2c0] sm:$0xff] }
  0x26   :  { %112 = vmatmul.f32.vlgmr.msra.gmra.mxu1 %v39_v23  ;;  %88 = vmatpush.msra.mxu0 %v41_v33 }
  0x27   :  { %89 = vmatmul.f32.vlgmr.msra.gmra.mxu0 %v39_v23  ;;  %243 = vmatpush.msra.mxu3 %v211_v5  ;;  %v379_v5 = vld [vmem:[#allocation2 + $0x2b8] sm:$0xff] }
  0x29   :  { %244 = vmatpush.msra.mxu3 %v209_v9  ;;  %v375_v9 = vld [vmem:[#allocation2 + $0x298] sm:$0xff] }
  0x2b   :  { %245 = vmatpush.msra.mxu3 %v207_v13 }
  0x2d   :  { %246 = vmatpush.msra.mxu3 %v205_v17  ;;  %v371_v17 = vld [vmem:[#allocation2 + $0x278] sm:$0xff] }
  0x2e   :  { %115 = vmatmul.f32.gmra.mxu1 %v40_v24 }
  0x2f   :  { %92 = vmatmul.f32.gmra.mxu0 %v40_v24  ;;  %v201_v24 = vld [vmem:[#allocation2 + $0x100] sm:$0xff]  ;;  %247 = vmatpush.msra.mxu3 %v203_v20 }
  0x31   :  { %248 = vmatpush.msra.mxu3 %v201_v24 }
  0x33   :  { %411 = vmatpush.msrb.mxu3 %v387_v60 }
  0xa3   :  { %v113_v34 = vpop.f32.mrf.mxu1 }
  0xa4   :  { %v90_v41 = vpop.f32.mrf.mxu0 }
  0xab   :  { %v116_v35 = vpop.f32.mrf.mxu1 }
  0xac   :  { %140 = vmatpush.msra.mxu2 %v116_v35  ;;  %v93_v54 = vpop.f32.mrf.mxu0 }
  0xae   :  { %141 = vmatpush.msra.mxu2 %v113_v34 }
  0xaf   :  { %529 = vmatmul.msk.f32.vlgmr.msra.gmra.mxu2 %vm119_vm0, %v651_v36 }
  0xb0   :  { %256 = vmatpush.msrb.mxu2 %v232_v39 }
  0xb2   :  { %257 = vmatpush.msrb.mxu2 %v230_v42 }
  0xb4   :  { %258 = vmatpush.msrb.mxu2 %v228_v44 }
  0xb6   :  { %259 = vmatpush.msrb.mxu2 %v226_v46 }
  0xb7   :  { %530 = vmatmul.msk.f32.gmra.mxu2 %vm119_vm0, %v658_v37 }
  0xb8   :  { %260 = vmatpush.msrb.mxu2 %v224_v49 }
  0xba   :  { %261 = vmatpush.msrb.mxu2 %v222_v51 }
  0xbc   :  { %262 = vmatpush.msrb.mxu2 %v220_v53 }
  0xbe   :  { %263 = vmatpush.msrb.mxu2 %v218_v57 }
  0xc0   :  { %264 = vmatpush.msrb.mxu2 %v216_v61  ;;  %v384_v61 = vld [vmem:[#allocation2 + $0x2e0] sm:$0xff] }
  0xc2   :  { %265 = vmatpush.msrb.mxu2 %v214_v2  ;;  %v381_v2 = vld [vmem:[#allocation2 + $0x2c8] sm:$0xff] }
  0xc4   :  { %266 = vmatpush.msrb.mxu2 %v212_v6  ;;  %v376_v6 = vld [vmem:[#allocation2 + $0x2a0] sm:$0xff] }
  0xc6   :  { %267 = vmatpush.msrb.mxu2 %v210_v10 }
  0xc8   :  { %268 = vmatpush.msrb.mxu2 %v208_v14 }
  0xca   :  { %269 = vmatpush.msrb.mxu2 %v206_v18 }
  0xcc   :  { %270 = vmatpush.msrb.mxu2 %v204_v21  ;;  %v368_v21 = vld [vmem:[#allocation2 + $0x260] sm:$0xff] }
  0xce   :  { %271 = vmatpush.msrb.mxu2 %v202_v25  ;;  %v366_v25 = vld [vmem:[#allocation2 + $0x250] sm:$0xff] }
 0x132   :  { %v143_v47 = vpop.f32.mrf.mxu2 }
 0x133   :  { %v662_v55 = vadd.f32 %v143_v47, %v90_v41  ;;  %v172_v41 = vld [vmem:[%s718_s3] sm:$0x1] }
 0x135   :  { %v158_v62 = vmul.f32 %v662_v55, %v662_v55 }
 0x13a   :  { %v146_v58 = vpop.f32.mrf.mxu2 }
 0x13b   :  { %v664_v59 = vadd.f32 %v146_v58, %v93_v54 }
 0x13d   :  { %v151_v63 = vadd.f32 %v664_v59, %v662_v55  ;;  %v159_v0 = vmul.f32 %v664_v59, %v664_v59 }
 0x13f   :  { %v152_v3 = vrot.slane %v151_v63, 4  ;;  %v160_v4 = vadd.f32 %v159_v0, %v158_v62  ;;  %v382_v62 = vld [vmem:[#allocation2 + $0x2d0] sm:$0xff] }
 0x141   :  { %v153_v7 = vadd.f32 %v152_v3, %v151_v63  ;;  %v161_v8 = vrot.slane %v160_v4, 4  ;;  %v383_v63 = vld [vmem:[#allocation2 + $0x2d8] sm:$0xff] }
 0x143   :  { %v154_v11 = vrot.slane %v153_v7, 2  ;;  %v162_v12 = vadd.f32 %v161_v8, %v160_v4  ;;  %v378_v4 = vld [vmem:[#allocation2 + $0x2b0] sm:$0xff] }
 0x144   :  { %v374_v8 = vld [vmem:[#allocation2 + $0x290] sm:$0xff] }
 0x145   :  { %v155_v15 = vadd.f32 %v154_v11, %v153_v7  ;;  %v163_v16 = vrot.slane %v162_v12, 2  ;;  %v377_v7 = vld [vmem:[#allocation2 + $0x2a8] sm:$0xff]  ;;  %v372_v11 = vld [vmem:[#allocation2 + $0x280] sm:$0xff] }
 0x147   :  { %v164_v19 = vadd.f32 %v163_v16, %v162_v12  ;;  %v156_v22 = vrot.slane %v155_v15, 1  ;;  %v373_v12 = vld [vmem:[#allocation2 + $0x288] sm:$0xff]  ;;  %v370_v16 = vld [vmem:[#allocation2 + $0x270] sm:$0xff] }
 0x149   :  { %v165_v23 = vrot.slane %v164_v19, 1  ;;  %v157_v26 = vadd.f32 %v156_v22, %v155_v15  ;;  %v369_v22 = vld [vmem:[#allocation2 + $0x268] sm:$0xff] }
 0x14b   :  { %v166_v27 = vadd.f32 %v165_v23, %v164_v19  ;;  %v167_v28 = vmul.f32 0.0625, %v157_v26  ;;  %v367_v26 = vld [vmem:[#allocation2 + $0x258] sm:$0xff] }
 0x14d   :  { %v168_v29 = vmul.f32 0.0625, %v166_v27  ;;  %v169_v30 = vmul.f32 %v167_v28, %v167_v28 }
 0x14f   :  { %v170_v31 = vsub.f32 %v168_v29, %v169_v30  ;;  %v364_v29 = vld [vmem:[#allocation2 + $0x240] sm:$0xff]  ;;  %v365_v30 = vld [vmem:[#allocation2 + $0x248] sm:$0xff] }
 0x151   :  { %v171_v32 = vmax.f32 %v170_v31, 0.0 }
 0x153   :  { %v173_v33 = vadd.f32 1e-05, %v171_v32 }
 0x155   :  { %545 = vrsqrt.f32 %v173_v33  ;;  %vm180_vm2 = vweird.f32 %v173_v33 }
 0x15b   :  { %v546_v34 = vpop.eup %545 }
 0x15c   :  { %v175_v35 = vmul.f32 %v546_v34, %v173_v33  ;;  %vm181_vm1 = vweird.f32 %v546_v34  ;;  %v362_v33 = vld [vmem:[#allocation2 + $0x230] sm:$0xff] }
 0x15d   :  { %vm182_vm3 = vmor %vm180_vm2, %vm181_vm1 }
 0x15e   :  { %v176_v38 = vmul.f32 %v546_v34, %v175_v35 }
 0x160   :  { %v177_v39 = vmul.f32 0.5, %v176_v38 }
 0x162   :  { %v178_v40 = vsub.f32 1.5, %v177_v39  ;;  %v360_v39 = vld [vmem:[#allocation2 + $0x220] sm:$0xff] }
 0x164   :  { %v179_v42 = vmul.f32 %v546_v34, %v178_v40  ;;  %v361_v40 = vld [vmem:[#allocation2 + $0x228] sm:$0xff] }
 0x166   :  { %v183_v43 = vsel %vm182_vm3, %v546_v34, %v179_v42  ;;  %v363_v34 = vld [vmem:[#allocation2 + $0x238] sm:$0xff] }
 0x167   :  { %v184_v44 = vmul.f32 %v183_v43, %v172_v41  ;;  %v358_v43 = vld [vmem:[#allocation2 + $0x210] sm:$0xff] }
 0x169   :  { %v186_v46 = vmul.f32 %v184_v44, %v167_v28  ;;  %v189_v47 = vperm.slane %v184_v44, 0  ;;  %v359_v44 = vld [vmem:[#allocation2 + $0x218] sm:$0xff] }
 0x16b   :  { %v187_v48 = vsub.f32 %v185_v45, %v186_v46  ;;  %v191_v49 = vmul.f32 %v189_v47, %v662_v55  ;;  %v192_v53 = vmul.f32 %v189_v47, %v664_v59  ;;  %v386_v55 = vld [vmem:[#allocation2 + $0x2f0] sm:$0xff]  ;;  %v385_v59 = vld [vmem:[#allocation2 + $0x2e8] sm:$0xff]  ;;  %v356_v47 = vld [vmem:[#allocation2 + $0x200] sm:$0xff] }
 0x16c   :  { %388 = vmatpush.msrb.mxu1 %v386_v55  ;;  %412 = vmatpush.msrb.mxu3 %v385_v59  ;;  %v533_v59 = vld [vmem:[%s718_s3 + $0x1] sm:$0x1] }
 0x16d   :  { %v194_v50 = vperm.slane %v187_v48, 0  ;;  %v357_v48 = vld [vmem:[#allocation2 + $0x208] sm:$0xff] }
 0x16e   :  { %389 = vmatpush.msrb.mxu1 %v384_v61  ;;  %413 = vmatpush.msrb.mxu3 %v383_v63 }
 0x16f   :  { %v196_v51 = vadd.f32 %v194_v50, %v191_v49  ;;  %v197_v54 = vadd.f32 %v194_v50, %v192_v53 }
 0x170   :  { %390 = vmatpush.msrb.mxu1 %v382_v62  ;;  %414 = vmatpush.msrb.mxu3 %v381_v2 }
 0x171   :  { %v198_v52 = vmax.f32 %v196_v51, 0.0  ;;  %v199_v56 = vmax.f32 %v197_v54, 0.0 }
 0x172   :  { %391 = vmatpush.msrb.mxu1 %v380_v1  ;;  %415 = vmatpush.msrb.mxu3 %v379_v5  ;;  %v534_v1 = vld [vmem:[%s719_s4 + $0x1] sm:$0x1] }
 0x173   :  { %249 = vmatmul.f32.vlgmr.msra.gmra.mxu3 %v198_v52  ;;  %272 = vmatmul.f32.vlgmr.msrb.gmra.mxu2 %v198_v52 }
 0x174   :  { %392 = vmatpush.msrb.mxu1 %v378_v4  ;;  %416 = vmatpush.msrb.mxu3 %v377_v7 }
 0x176   :  { %393 = vmatpush.msrb.mxu1 %v376_v6  ;;  %417 = vmatpush.msrb.mxu3 %v375_v9 }
 0x178   :  { %394 = vmatpush.msrb.mxu1 %v374_v8  ;;  %418 = vmatpush.msrb.mxu3 %v373_v12 }
 0x17a   :  { %395 = vmatpush.msrb.mxu1 %v372_v11  ;;  %419 = vmatpush.msrb.mxu3 %v371_v17 }
 0x17b   :  { %252 = vmatmul.f32.gmra.mxu3 %v199_v56  ;;  %275 = vmatmul.f32.gmra.mxu2 %v199_v56 }
 0x17c   :  { %396 = vmatpush.msrb.mxu1 %v370_v16  ;;  %420 = vmatpush.msrb.mxu3 %v369_v22 }
 0x17e   :  { %397 = vmatpush.msrb.mxu1 %v368_v21  ;;  %421 = vmatpush.msrb.mxu3 %v367_v26 }
 0x180   :  { %398 = vmatpush.msrb.mxu1 %v366_v25  ;;  %422 = vmatpush.msrb.mxu3 %v365_v30 }
 0x182   :  { %399 = vmatpush.msrb.mxu1 %v364_v29  ;;  %423 = vmatpush.msrb.mxu3 %v363_v34 }
 0x184   :  { %400 = vmatpush.msrb.mxu1 %v362_v33  ;;  %424 = vmatpush.msrb.mxu3 %v361_v40 }
 0x186   :  { %401 = vmatpush.msrb.mxu1 %v360_v39  ;;  %425 = vmatpush.msrb.mxu3 %v359_v44 }
 0x188   :  { %402 = vmatpush.msrb.mxu1 %v358_v43  ;;  %426 = vmatpush.msrb.mxu3 %v357_v48 }
 0x18a   :  { %403 = vmatpush.msrb.mxu1 %v356_v47  ;;  %v537_v47 = vld [vmem:[%s718_s3 + $0x2] sm:$0x1]  ;;  %s607_s3 = smov 128  }
 0x1f6   :  { %v273_v57 = vpop.f32.mrf.mxu2  ;;  %v250_v0 = vpop.f32.mrf.mxu3 }
 0x1fe   :  { %v276_v58 = vpop.f32.mrf.mxu2  ;;  %v253_v13 = vpop.f32.mrf.mxu3 }
 0x1ff   :  { %293 = vmatpush.msrb.mxu0 %v276_v58 }
 0x201   :  { %294 = vmatpush.msrb.mxu0 %v273_v57 }
 0x202   :  { %531 = vmatmul.msk.f32.vlgmr.msrb.gmra.mxu0 %vm119_vm0, %v651_v36 }
 0x20a   :  { %532 = vmatmul.msk.f32.gmra.mxu0 %vm119_vm0, %v658_v37 }
 0x27f   :  { %v296_v3 = vpop.f32.mrf.mxu0 }
 0x280   :  { %v684_v10 = vadd.f32 %v296_v3, %v250_v0 }
 0x282   :  { %v311_v18 = vmul.f32 %v684_v10, %v684_v10 }
 0x287   :  { %v299_v14 = vpop.f32.mrf.mxu0 }
 0x288   :  { %v686_v15 = vadd.f32 %v299_v14, %v253_v13 }
 0x28a   :  { %v304_v19 = vadd.f32 %v686_v15, %v684_v10  ;;  %v312_v20 = vmul.f32 %v686_v15, %v686_v15 }
 0x28c   :  { %v305_v23 = vrot.slane %v304_v19, 4  ;;  %v313_v24 = vadd.f32 %v312_v20, %v311_v18 }
 0x28e   :  { %v306_v27 = vadd.f32 %v305_v23, %v304_v19  ;;  %v314_v28 = vrot.slane %v313_v24, 4 }
 0x290   :  { %v307_v31 = vrot.slane %v306_v27, 2  ;;  %v315_v32 = vadd.f32 %v314_v28, %v313_v24 }
 0x292   :  { %v308_v35 = vadd.f32 %v307_v31, %v306_v27  ;;  %v316_v38 = vrot.slane %v315_v32, 2 }
 0x294   :  { %v309_v41 = vrot.slane %v308_v35, 1  ;;  %v317_v42 = vadd.f32 %v316_v38, %v315_v32 }
 0x296   :  { %v310_v45 = vadd.f32 %v309_v41, %v308_v35  ;;  %v318_v46 = vrot.slane %v317_v42, 1 }
 0x298   :  { %v319_v49 = vadd.f32 %v318_v46, %v317_v42  ;;  %v320_v50 = vmul.f32 0.0625, %v310_v45 }
 0x29a   :  { %v321_v51 = vmul.f32 0.0625, %v319_v49  ;;  %v322_v52 = vmul.f32 %v320_v50, %v320_v50 }
 0x29c   :  { %v323_v53 = vsub.f32 %v321_v51, %v322_v52  ;;  %v538_v51 = vld [vmem:[%s719_s4 + $0x2] sm:$0x1]  ;;  %s608_s4 = smov 8  }
 0x29e   :  { %v324_v54 = vmax.f32 %v323_v53, 0.0 }
 0x2a0   :  { %v327_v56 = vadd.f32 1e-05, %v324_v54 }
 0x2a2   :  { %547 = vrsqrt.f32 %v327_v56  ;;  %vm334_vm5 = vweird.f32 %v327_v56 }
 0x2a8   :  { %v548_v57 = vpop.eup %547 }
 0x2a9   :  { %v329_v58 = vmul.f32 %v548_v57, %v327_v56  ;;  %vm335_vm4 = vweird.f32 %v548_v57 }
 0x2aa   :  { %vm336_vm6 = vmor %vm334_vm5, %vm335_vm4 }
 0x2ab   :  { %v330_v55 = vmul.f32 %v548_v57, %v329_v58 }
 0x2ad   :  { %v331_v60 = vmul.f32 0.5, %v330_v55 }
 0x2af   :  { %v332_v61 = vsub.f32 1.5, %v331_v60 }
 0x2b1   :  { %v333_v62 = vmul.f32 %v548_v57, %v332_v61 }
 0x2b3   :  { %v337_v63 = vsel %vm336_vm6, %v548_v57, %v333_v62 }
 0x2b4   :  { %v338_v0 = vmul.f32 %v533_v59, %v337_v63 }
 0x2b6   :  { %v341_v2 = vmul.f32 %v338_v0, %v320_v50  ;;  %v344_v3 = vperm.slane %v338_v0, 0 }
 0x2b8   :  { %v342_v4 = vsub.f32 %v534_v1, %v341_v2  ;;  %v346_v5 = vmul.f32 %v344_v3, %v684_v10  ;;  %v347_v9 = vmul.f32 %v344_v3, %v686_v15 }
 0x2ba   :  { %v349_v6 = vperm.slane %v342_v4, 0 }
 0x2bc   :  { %v351_v7 = vadd.f32 %v349_v6, %v346_v5  ;;  %v352_v11 = vadd.f32 %v349_v6, %v347_v9 }
 0x2be   :  { %v353_v8 = vmax.f32 %v351_v7, 0.0  ;;  %v354_v12 = vmax.f32 %v352_v11, 0.0 }
 0x2c0   :  { %404 = vmatmul.f32.vlgmr.msrb.gmra.mxu1 %v353_v8  ;;  %427 = vmatmul.f32.vlgmr.msrb.gmra.mxu3 %v353_v8 }
 0x2c8   :  { %407 = vmatmul.f32.gmra.mxu1 %v354_v12  ;;  %430 = vmatmul.f32.gmra.mxu3 %v354_v12 }
 0x33d   :  { %v405_v10 = vpop.f32.mrf.mxu1 }
 0x343   :  { %v428_v13 = vpop.f32.mrf.mxu3 }
 0x345   :  { %v408_v18 = vpop.f32.mrf.mxu1 }
 0x34b   :  { %v431_v14 = vpop.f32.mrf.mxu3 }
 0x34c   :  { %448 = vmatpush.msra.mxu2 %v431_v14 }
 0x34e   :  { %449 = vmatpush.msra.mxu2 %v428_v13 }
 0x34f   :  { %535 = vmatmul.msk.f32.vlgmr.msra.gmra.mxu2 %vm119_vm0, %v651_v36 }
 0x357   :  { %536 = vmatmul.msk.f32.gmra.mxu2 %vm119_vm0, %v658_v37 }
 0x3d2   :  { %v451_v16 = vpop.f32.mrf.mxu2 }
 0x3d3   :  { %v457_v17 = vadd.f32 %v451_v16, %v405_v10 }
 0x3d5   :  { %v466_v20 = vmul.f32 %v457_v17, %v457_v17 }
 0x3da   :  { %v454_v19 = vpop.f32.mrf.mxu2 }
 0x3db   :  { %v458_v15 = vadd.f32 %v454_v19, %v408_v18 }
 0x3dd   :  { %v459_v21 = vadd.f32 %v458_v15, %v457_v17  ;;  %v467_v22 = vmul.f32 %v458_v15, %v458_v15 }
 0x3df   :  { %v460_v23 = vrot.slane %v459_v21, 4  ;;  %v468_v24 = vadd.f32 %v467_v22, %v466_v20 }
 0x3e1   :  { %v461_v25 = vadd.f32 %v460_v23, %v459_v21  ;;  %v469_v26 = vrot.slane %v468_v24, 4 }
 0x3e3   :  { %v462_v27 = vrot.slane %v461_v25, 2  ;;  %v470_v28 = vadd.f32 %v469_v26, %v468_v24 }
 0x3e5   :  { %v463_v29 = vadd.f32 %v462_v27, %v461_v25  ;;  %v471_v36 = vrot.slane %v470_v28, 2 }
 0x3e7   :  { %v464_v30 = vrot.slane %v463_v29, 1  ;;  %v472_v31 = vadd.f32 %v471_v36, %v470_v28 }
 0x3e9   :  { %v465_v37 = vadd.f32 %v464_v30, %v463_v29  ;;  %v473_v32 = vrot.slane %v472_v31, 1 }
 0x3eb   :  { %v474_v33 = vadd.f32 %v473_v32, %v472_v31  ;;  %v475_v34 = vmul.f32 0.0625, %v465_v37 }
 0x3ed   :  { %v476_v35 = vmul.f32 0.0625, %v474_v33  ;;  %v477_v38 = vmul.f32 %v475_v34, %v475_v34 }
 0x3ef   :  { %v478_v39 = vsub.f32 %v476_v35, %v477_v38 }
 0x3f1   :  { %v479_v40 = vmax.f32 %v478_v39, 0.0 }
 0x3f3   :  { %v482_v41 = vadd.f32 1e-05, %v479_v40 }
 0x3f5   :  { %549 = vrsqrt.f32 %v482_v41  ;;  %vm489_vm8 = vweird.f32 %v482_v41 }
 0x3fb   :  { %v550_v42 = vpop.eup %549 }
 0x3fc   :  { %v484_v43 = vmul.f32 %v550_v42, %v482_v41  ;;  %vm490_vm7 = vweird.f32 %v550_v42 }
 0x3fd   :  { %vm491_vm9 = vmor %vm489_vm8, %vm490_vm7 }
 0x3fe   :  { %v485_v44 = vmul.f32 %v550_v42, %v484_v43 }
 0x400   :  { %v486_v45 = vmul.f32 0.5, %v485_v44 }
 0x402   :  { %v487_v46 = vsub.f32 1.5, %v486_v45 }
 0x404   :  { %v488_v48 = vmul.f32 %v550_v42, %v487_v46 }
 0x406   :  { %v492_v49 = vsel %vm491_vm9, %v550_v42, %v488_v48 }
 0x407   :  { %v493_v50 = vmul.f32 %v537_v47, %v492_v49 }
 0x409   :  { %v496_v52 = vmul.f32 %v493_v50, %v475_v34  ;;  %v499_v53 = vperm.slane %v493_v50, 0 }
 0x40b   :  { %v497_v54 = vsub.f32 %v538_v51, %v496_v52  ;;  %v501_v56 = vmul.f32 %v499_v53, %v457_v17  ;;  %v502_v57 = vmul.f32 %v499_v53, %v458_v15 }
 0x40d   :  { %v504_v58 = vperm.slane %v497_v54, 0 }
 0x40f   :  { %v506_v55 = vadd.f32 %v504_v58, %v501_v56  ;;  %v507_v60 = vadd.f32 %v504_v58, %v502_v57 }
 0x411   :  { %509 = vst [vmem:[#allocation5 + $0x8] sm:$0xff] %v507_v60 }
 0x412   :  { %508 = vst [vmem:[#allocation5] sm:$0xff] %v506_v55 }
 0x413   :  { %522 = dma.vmem_to_hbm [thread:$0]  %s515_s18, 256, %s517_s21, [#allocation4], %s607_s3, %s607_s3, %s608_s4  }
 0x414   :  { %601 = dma.done.wait [#allocation4], 256  }
 0x415   :  { %602 = vsyncadd [#allocation4], 4294967040 }
 0x416   :  { %527 = vsyncpa [#allocation3], 1 }
 0x417   :  { %528 = vsyncpa [#allocation4], 1 }

</bundles_post_ra>
